<compile_context>
chip_gen: v7x
topology: tpu7x:2x2x1
jax: 0.10.0
libtpu: 0.0.40
codegen_flags: <defaults>
</compile_context>

<pallas_src>
import jax
import jax.numpy as jnp
from jax.experimental import pallas as pl
from jax.experimental.pallas import tpu as pltpu


# ----------------------------- projection kernel -----------------------------
def _patch_proj_kernel(x_ref, w_ref, b_ref, o_ref):
    # x_ref: (tm, K)  patch rows (native dtype)
    # w_ref: (K,  E)  reshaped conv weight (native dtype, VMEM-resident)
    # b_ref: (1,  E)  conv bias (f32, VMEM-resident)
    # o_ref: (tm, E)  output block
    acc = jnp.dot(x_ref[...], w_ref[...], preferred_element_type=jnp.float32)
    o_ref[...] = (acc + b_ref[...]).astype(o_ref.dtype)


def _round_up(x, m):
    return (x + m - 1) // m * m


def _pick_tm(M, K, E, itemsize, vmem_budget_bytes=16 * 1024 * 1024):
    # Per-M-row bytes that get double-buffered across the grid (input block in,
    # output block out).  Weight + bias use a constant index_map and stay
    # resident; count them twice to be conservative.
    per_row = 2 * (K + E) * itemsize
    resident = 2 * (K * E * itemsize + E * 4)
    avail = max(vmem_budget_bytes - resident, 8 * per_row)
    tm = int(avail // per_row)
    tm = max(8, min(1024, (tm // 8) * 8))
    tm = min(tm, _round_up(M, 8))
    return tm


def patch_projection(xm, wm, bias):
    """xm: (M, K) patch matrix, wm: (K, E) weight, bias: (E,) -> (M, E)."""
    M, K = xm.shape
    K2, E = wm.shape
    assert K == K2
    itemsize = jnp.dtype(xm.dtype).itemsize
    tm = _pick_tm(M, K, E, itemsize)

    b2d = bias.astype(jnp.float32).reshape(1, E)

    out = pl.pallas_call(
        _patch_proj_kernel,
        out_shape=jax.ShapeDtypeStruct((M, E), xm.dtype),
        grid=(pl.cdiv(M, tm),),
        in_specs=[
            pl.BlockSpec((tm, K), lambda i: (i, 0)),   # patch rows, streamed
            pl.BlockSpec((K, E), lambda i: (0, 0)),    # weight, resident
            pl.BlockSpec((1, E), lambda i: (0, 0)),    # bias, resident
        ],
        out_specs=pl.BlockSpec((tm, E), lambda i: (i, 0)),
        compiler_params=pltpu.CompilerParams(
            dimension_semantics=("parallel",),
        ),
        cost_estimate=pl.CostEstimate(
            flops=2 * M * K * E,
            transcendentals=0,
            bytes_accessed=(M * K + K * E + M * E) * itemsize,
        ),
    )(xm, wm, b2d)
    return out


# ----------------------------- module forward -----------------------------
def patch_embed3d_forward(x, w_conv, b_conv, patch_size=(2, 4, 4), flatten=True):
    """Pallas implementation of PatchEmbed3D.forward (norm_layer=None).

    x:      (B, C_in, D, H, W)
    w_conv: (embed_dim, C_in, pt, ph, pw)  -- PyTorch Conv3d weight layout
    b_conv: (embed_dim,)
    returns (B, N, embed_dim) if flatten else (B, embed_dim, D', H', W')
    """
    pt, ph, pw = patch_size
    B, C, D, H, W = x.shape
    E = w_conv.shape[0]

    # Right-side padding, matching the torch F.pad calls.
    pad_w = (-W) % pw
    pad_h = (-H) % ph
    pad_d = (-D) % pt
    if pad_w or pad_h or pad_d:
        x = jnp.pad(x, ((0, 0), (0, 0), (0, pad_d), (0, pad_h), (0, pad_w)))
    Dp, Hp, Wp = D + pad_d, H + pad_h, W + pad_w
    nd, nh, nw = Dp // pt, Hp // ph, Wp // pw
    Npatch = nd * nh * nw
    K = C * pt * ph * pw

    # Patchify: (B, C, nd, pt, nh, ph, nw, pw) -> (B, nd, nh, nw, C, pt, ph, pw)
    # The trailing (C, pt, ph, pw) order matches w_conv.reshape(E, -1).
    # TODO(synk): this transpose is the remaining XLA HBM round trip (see header).
    xp = x.reshape(B, C, nd, pt, nh, ph, nw, pw)
    xp = xp.transpose(0, 2, 4, 6, 1, 3, 5, 7)
    xm = xp.reshape(B * Npatch, K)

    # Note: casting the conv weight to x.dtype deviates slightly from PyTorch's
    # conv precision when x is bf16/fp8; accumulation stays f32 in the kernel.
    wm = w_conv.reshape(E, K).T.astype(x.dtype)  # (K, E)

    y = patch_projection(xm, wm, b_conv)  # (B*Npatch, E)

    if flatten:
        return y.reshape(B, Npatch, E)
    # conv-shaped output: (B, E, nd, nh, nw)
    return y.reshape(B, nd, nh, nw, E).transpose(0, 4, 1, 2, 3)


# ----------------------------- reference (pure JAX) -----------------------------
def patch_embed3d_reference(x, w_conv, b_conv, patch_size=(2, 4, 4), flatten=True):
    pt, ph, pw = patch_size
    B, C, D, H, W = x.shape
    pad_w = (-W) % pw
    pad_h = (-H) % ph
    pad_d = (-D) % pt
    if pad_w or pad_h or pad_d:
        x = jnp.pad(x, ((0, 0), (0, 0), (0, pad_d), (0, pad_h), (0, pad_w)))
    y = jax.lax.conv_general_dilated(
        x, w_conv, window_strides=patch_size, padding="VALID",
        dimension_numbers=("NCDHW", "OIDHW", "NCDHW"),
    )
    y = y + b_conv.reshape(1, -1, 1, 1, 1)
    if flatten:
        Bo, Eo, Do, Ho, Wo = y.shape
        y = y.reshape(Bo, Eo, Do * Ho * Wo).transpose(0, 2, 1)
    return y


if __name__ == "__main__":
    patch_size = (2, 4, 4)
    in_chans = 3
    embed_dim = 96

    key = jax.random.PRNGKey(0)
    kx, kw, kb, kx2 = jax.random.split(key, 4)

    fan_in = in_chans * patch_size[0] * patch_size[1] * patch_size[2]
    w_conv = jax.random.normal(
        kw, (embed_dim, in_chans) + patch_size, dtype=jnp.float32
    ) * (fan_in ** -0.5)
    b_conv = jax.random.normal(kb, (embed_dim,), dtype=jnp.float32) * 0.02

    # Case 1: divisible spatial dims, flatten=True (module default path).
    x1 = jax.random.normal(kx, (2, in_chans, 4, 16, 16), dtype=jnp.float32)
    out1 = patch_embed3d_forward(x1, w_conv, b_conv, patch_size, flatten=True)
    out1 = jax.block_until_ready(out1)
    ref1 = patch_embed3d_reference(x1, w_conv, b_conv, patch_size, flatten=True)
    assert out1.shape == (2, (4 // 2) * (16 // 4) * (16 // 4), embed_dim)
    assert jnp.allclose(out1, ref1, atol=1e-4, rtol=1e-4), "mismatch vs reference (case 1)"

    # Case 1b: flatten=False (conv-shaped output).
    out1b = patch_embed3d_forward(x1, w_conv, b_conv, patch_size, flatten=False)
    out1b = jax.block_until_ready(out1b)
    ref1b = patch_embed3d_reference(x1, w_conv, b_conv, patch_size, flatten=False)
    assert out1b.shape == ref1b.shape
    assert jnp.allclose(out1b, ref1b, atol=1e-4, rtol=1e-4), "mismatch vs reference (case 1b)"

    # Case 2: non-divisible spatial dims (exercises the pad branch and the
    # ragged last M block handled by Pallas store masking).
    x2 = jax.random.normal(kx2, (1, in_chans, 5, 9, 10), dtype=jnp.float32)
    out2 = patch_embed3d_forward(x2, w_conv, b_conv, patch_size, flatten=True)
    out2 = jax.block_until_ready(out2)
    ref2 = patch_embed3d_reference(x2, w_conv, b_conv, patch_size, flatten=True)
    assert out2.shape == ref2.shape
    assert jnp.allclose(out2, ref2, atol=1e-4, rtol=1e-4), "mismatch vs reference (case 2)"

    print("KERNEL_OK")
</pallas_src>

<mosaic_0001>
module attributes {stable_mosaic.version = 11 : i64} {
  func.func @_patch_proj_kernel(%arg0: i32, %arg1: memref<64x96xf32, #tpu.memory_space<vmem>>, %arg2: memref<96x96xf32, #tpu.memory_space<vmem>>, %arg3: memref<1x96xf32, #tpu.memory_space<vmem>>, %arg4: memref<64x96xf32, #tpu.memory_space<vmem>>) attributes {dimension_semantics = [#tpu.dimension_semantics<parallel>], iteration_bounds = array<i64: 1>, scalar_prefetch = 0 : i64, scratch_operands = 0 : i64, tpu.core_type = #tpu.core_type<tc>, window_params = [{transform_indices = @transform_0, window_bounds = array<i64: 64, 96>}, {pipeline_mode = #tpu.pipeline_mode<synchronous>, transform_indices = @transform_1, window_bounds = array<i64: 96, 96>}, {pipeline_mode = #tpu.pipeline_mode<synchronous>, transform_indices = @transform_2, window_bounds = array<i64: 1, 96>}, {transform_indices = @transform_3, window_bounds = array<i64: 64, 96>}]} {
    %c0 = arith.constant 0 : index
    %c0_0 = arith.constant 0 : index
    %0 = vector.load %arg1[%c0, %c0_0] : memref<64x96xf32, #tpu.memory_space<vmem>>, vector<64x96xf32>
    %c0_1 = arith.constant 0 : index
    %c0_2 = arith.constant 0 : index
    %1 = vector.load %arg2[%c0_1, %c0_2] : memref<96x96xf32, #tpu.memory_space<vmem>>, vector<96x96xf32>
    %cst = arith.constant dense<0.000000e+00> : vector<64x96xf32>
    %2 = tpu.matmul %0, %1, %cst {dimension_numbers = #tpu.dot_dimension_numbers<[1], [0], [0], [1], [0, 0, 1, 1], [], []>} : vector<64x96xf32>, vector<96x96xf32>, vector<64x96xf32> -> vector<64x96xf32>
    %c0_3 = arith.constant 0 : index
    %c0_4 = arith.constant 0 : index
    %3 = vector.load %arg3[%c0_3, %c0_4] : memref<1x96xf32, #tpu.memory_space<vmem>>, vector<1x96xf32>
    %4 = vector.broadcast %3 : vector<1x96xf32> to vector<64x96xf32>
    %5 = arith.addf %2, %4 : vector<64x96xf32>
    %c0_5 = arith.constant 0 : index
    %c0_6 = arith.constant 0 : index
    %6 = vector.load %arg4[%c0_5, %c0_6] : memref<64x96xf32, #tpu.memory_space<vmem>>, vector<64x96xf32>
    tpu.vector_store %arg4[%c0_5, %c0_6], %5 {strides = array<i32>} : memref<64x96xf32, #tpu.memory_space<vmem>>, vector<64x96xf32>,
    return
  }
  func.func @transform_0(%arg0: i32) -> (i32, i32) {
    %c0_i32 = arith.constant 0 : i32
    %c0_i32_0 = arith.constant 0 : i32
    return %arg0, %c0_i32 : i32, i32
  }
  func.func @transform_1(%arg0: i32) -> (i32, i32) {
    %c0_i32 = arith.constant 0 : i32
    %c0_i32_0 = arith.constant 0 : i32
    %c0_i32_1 = arith.constant 0 : i32
    return %c0_i32, %c0_i32_0 : i32, i32
  }
  func.func @transform_2(%arg0: i32) -> (i32, i32) {
    %c0_i32 = arith.constant 0 : i32
    %c0_i32_0 = arith.constant 0 : i32
    %c0_i32_1 = arith.constant 0 : i32
    return %c0_i32, %c0_i32_0 : i32, i32
  }
  func.func @transform_3(%arg0: i32) -> (i32, i32) {
    %c0_i32 = arith.constant 0 : i32
    %c0_i32_0 = arith.constant 0 : i32
    return %arg0, %c0_i32 : i32, i32
  }
}

</mosaic_0001>

<bundles_post_ra>
// kernel: tpu_custom_call.1
= control target key start
LH: loop header
LB: loop body
LE: loop exit
PB: predicated region body
PF: predicated region fallthrough
CT: control target
= control target key end

     0   :  { %8 = vsyncpa [#allocation3], 0  ;;  %s493_s0 = inlined_call_operand.hbm [shape: f32[64,96], index: 0, kind: input, shape index: {}]   ;;  %s494_s1 = inlined_call_operand.hbm [shape: f32[96,96], index: 1, kind: input, shape index: {}]   ;;  %s495_s2 = inlined_call_operand.vmem [shape: f32[1,96], index: 2, kind: input, shape index: {}]   ;;  %s496_s3 = inlined_call_operand.hbm [shape: f32[64,96], index: 3, kind: output, shape index: {}]  }
   0x1   :  { %9 = vsyncpa [#allocation6], 0 }
   0x2   :  { %10 = vsyncpa [#allocation4], 0  ;;  %s404_s12 = smov [#allocation2]   ;;  %s332_s16 = scalar_lea.hbm %s493_s0, 1024 }
   0x3   :  { %s16_s13 = sshll.u32 %s404_s12, 4  ;;  %p333_p0 = scmp.ne.s32.totalorder %s493_s0, %s332_s16  ;;  %s17_s13 = int_to_ptr.vmem [resolvable:$true] %s16_s13 }
   0x4   :  { %p336_p1 = scmp.lt.u32.totalorder %s332_s16, %s493_s0 }
   0x6   :  { %p338_p2 = pnand %p336_p1, %p333_p0 }
   0x8   :  { %341 = shalt.err (!%p338_p2)
}
   0x9   :  { %s342_s21 = scalar_lea.vmem %s17_s13, 1024  ;;  %p347_p4 = scmp.lt.s32.totalorder %s17_s13, %s17_s13 }
   0xa   :  { %p343_p3 = scmp.ne.s32.totalorder %s17_s13, %s342_s21  ;;  %p348_p5 = scmp.lt.s32.totalorder %s342_s21, %s342_s21 }
   0xc   :  { %p349_p6 = por %p348_p5, %p347_p4 }
   0xe   :  { %p350_p7 = pnand %p349_p6, %p343_p3 }
  0x10   :  { %353 = shalt.err (!%p350_p7)
}
  0x11   :  { %s405_s22 = smov 128   ;;  %s406_s23 = smov 8  }
  0x12   :  { %22 = dma.hbm_to_vmem [thread:$0]  %s493_s0, 1024, %s17_s13, [#allocation3], %s405_s22, %s405_s22, %s406_s23  }
  0x13   :  { %s407_s26 = smov [#allocation5]   ;;  %s354_s30 = scalar_lea.hbm %s494_s1, 1536 }
  0x14   :  { %s28_s27 = sshll.u32 %s407_s26, 4  ;;  %p355_p8 = scmp.ne.s32.totalorder %s494_s1, %s354_s30  ;;  %s29_s27 = int_to_ptr.vmem [resolvable:$true] %s28_s27 }
  0x15   :  { %p358_p9 = scmp.lt.u32.totalorder %s354_s30, %s494_s1 }
  0x17   :  { %p360_p10 = pnand %p358_p9, %p355_p8 }
  0x19   :  { %363 = shalt.err (!%p360_p10)
}
  0x1a   :  { %s364_s8 = scalar_lea.vmem %s29_s27, 1536  ;;  %p369_p12 = scmp.lt.s32.totalorder %s29_s27, %s29_s27 }
  0x1b   :  { %p365_p11 = scmp.ne.s32.totalorder %s29_s27, %s364_s8  ;;  %p370_p13 = scmp.lt.s32.totalorder %s364_s8, %s364_s8 }
  0x1d   :  { %p371_p0 = por %p370_p13, %p369_p12 }
  0x1f   :  { %p372_p1 = pnand %p371_p0, %p365_p11 }
  0x21   :  { %375 = shalt.err (!%p372_p1)
}
  0x22   :  { %34 = dma.hbm_to_vmem [thread:$0]  %s494_s1, 1536, %s29_s27, [#allocation6], %s405_s22, %s405_s22, %s406_s23  }
  0x23   :  { %398 = dma.done.wait [#allocation3], 1024  }
  0x24   :  { %399 = vsyncadd [#allocation3], 4294966272 }
  0x25   :  { %400 = dma.done.wait [#allocation6], 1536  }
  0x26   :  { %401 = vsyncadd [#allocation6], 4294965760  ;;  %v51_v0 = vld [vmem:[#allocation5] sm:$0xff]  ;;  %v52_v1 = vld [vmem:[#allocation5 + $0x8] sm:$0xff]  ;;  %vm70_vm0 = vcmask 785408   ;;  %s408_s11 = smov [#allocation7]  }
  0x27   :  { %v53_v2 = vld [vmem:[#allocation5 + $0x10] sm:$0xff]  ;;  %v291_v3 = vpack.c.bf16 %v52_v1, %v51_v0  ;;  %v54_v4 = vld [vmem:[#allocation5 + $0x18] sm:$0xff]  ;;  %v55_v6 = vld [vmem:[#allocation5 + $0x20] sm:$0xff]  ;;  %s213_s12 = sshll.u32 %s408_s11, 4  ;;  %s214_s12 = int_to_ptr.vmem [resolvable:$true] %s213_s12 }
  0x28   :  { %v295_v5 = vpack.c.bf16 %v54_v4, %v53_v2  ;;  %v56_v7 = vld [vmem:[#allocation5 + $0x28] sm:$0xff]  ;;  %v43_v8 = vld [vmem:[#allocation2] sm:$0xff]  ;;  %v57_v11 = vld [vmem:[#allocation5 + $0x30] sm:$0xff]  ;;  %p381_p3 = scmp.lt.s32.totalorder %s214_s12, %s214_s12 }
  0x29   :  { %292 = vmatprep.subr.bf16.mxu0 %v291_v3  ;;  %315 = vmatprep.subr.bf16.mxu1 %v291_v3  ;;  %v47_v9 = vld [vmem:[#allocation2 + $0x20] sm:$0xff]  ;;  %v299_v10 = vpack.c.bf16 %v56_v7, %v55_v6  ;;  %v58_v12 = vld [vmem:[#allocation5 + $0x38] sm:$0xff]  ;;  %v60_v15 = vld [vmem:[#allocation5 + $0x48] sm:$0xff] }
  0x2a   :  { %294 = vmatpush3.bf16.msra.mxu0 %v291_v3  ;;  %321 = vmatpush3.bf16.msra.mxu1 %v291_v3  ;;  %v303_v13 = vpack.c.bf16 %v58_v12, %v57_v11  ;;  %v59_v14 = vld [vmem:[#allocation5 + $0x40] sm:$0xff]  ;;  %v61_v17 = vld [vmem:[#allocation5 + $0x50] sm:$0xff]  ;;  %v62_v18 = vld [vmem:[#allocation5 + $0x58] sm:$0xff] }
  0x2b   :  { %296 = vmatprep.subr.bf16.mxu0 %v295_v5  ;;  %316 = vmatprep.subr.bf16.mxu1 %v295_v5  ;;  %v307_v16 = vpack.c.bf16 %v60_v15, %v59_v14  ;;  %v311_v19 = vpack.c.bf16 %v62_v18, %v61_v17  ;;  %v44_v20 = vld [vmem:[#allocation2 + $0x8] sm:$0xff]  ;;  %v45_v22 = vld [vmem:[#allocation2 + $0x10] sm:$0xff]  ;;  %v46_v24 = vld [vmem:[#allocation2 + $0x18] sm:$0xff] }
  0x2c   :  { %279 = vmatprep.mubr.msk.f32.mxu0 %vm70_vm0, %v43_v8  ;;  %285 = vmatprep.mubr.msk.f32.mxu1 %vm70_vm0, %v47_v9  ;;  %v48_v21 = vld [vmem:[#allocation2 + $0x28] sm:$0xff]  ;;  %v49_v23 = vld [vmem:[#allocation2 + $0x30] sm:$0xff]  ;;  %v50_v25 = vld [vmem:[#allocation2 + $0x38] sm:$0xff] }
  0x2d   :  { %v226_v26 = vld [vmem:[%s495_s2] ss:$0 sm:$0xff]  ;;  %s376_s2 = scalar_lea.vmem %s214_s12, 1024 }
  0x2e   :  { %298 = vmatpush3.bf16.msra.mxu0 %v295_v5  ;;  %322 = vmatpush3.bf16.msra.mxu1 %v295_v5  ;;  %p377_p2 = scmp.ne.s32.totalorder %s214_s12, %s376_s2  ;;  %p382_p4 = scmp.lt.s32.totalorder %s376_s2, %s376_s2 }
  0x2f   :  { %300 = vmatprep.subr.bf16.mxu0 %v299_v10  ;;  %317 = vmatprep.subr.bf16.mxu1 %v299_v10 }
  0x30   :  { %p383_p5 = por %p382_p4, %p381_p3 }
  0x32   :  { %302 = vmatpush3.bf16.msra.mxu0 %v299_v10  ;;  %323 = vmatpush3.bf16.msra.mxu1 %v299_v10  ;;  %p384_p6 = pnand %p383_p5, %p377_p2 }
  0x33   :  { %304 = vmatprep.subr.bf16.mxu0 %v303_v13  ;;  %318 = vmatprep.subr.bf16.mxu1 %v303_v13 }
  0x36   :  { %306 = vmatpush3.bf16.msra.mxu0 %v303_v13  ;;  %324 = vmatpush3.bf16.msra.mxu1 %v303_v13 }
  0x37   :  { %308 = vmatprep.subr.bf16.mxu0 %v307_v16  ;;  %319 = vmatprep.subr.bf16.mxu1 %v307_v16 }
  0x3a   :  { %310 = vmatpush3.bf16.msra.mxu0 %v307_v16  ;;  %325 = vmatpush3.bf16.msra.mxu1 %v307_v16 }
  0x3b   :  { %312 = vmatprep.subr.bf16.mxu0 %v311_v19  ;;  %320 = vmatprep.subr.bf16.mxu1 %v311_v19 }
  0x3e   :  { %314 = vmatpush3.bf16.msra.mxu0 %v311_v19  ;;  %326 = vmatpush3.bf16.msra.mxu1 %v311_v19 }
  0x41   :  { %280 = vmatmul.mubr.msk.f32.vlgmr.msra.gmra.mrb[0].mxu0 %vm70_vm0, %v44_v20  ;;  %286 = vmatmul.mubr.msk.f32.vlgmr.msra.gmra.mrb[0].mxu1 %vm70_vm0, %v48_v21 }
  0x42   :  { %282 = vmatprep.mubr.msk.f32.mxu0 %vm70_vm0, %v45_v22  ;;  %288 = vmatprep.mubr.msk.f32.mxu1 %vm70_vm0, %v49_v23 }
  0x45   :  { %283 = vmatmul.mubr.msk.f32.gmra.mrb[2].mxu0 %vm70_vm0, %v46_v24  ;;  %289 = vmatmul.mubr.msk.f32.gmra.mrb[2].mxu1 %vm70_vm0, %v50_v25 }
 0x114   :  { %v281_v27 = vpop.f32.mrb[0].mxu0  ;;  %v287_v28 = vpop.f32.mrb[0].mxu1 }
 0x115   :  { %v167_v29 = vadd.f32 %v281_v27, %v226_v26  ;;  %v187_v30 = vadd.f32 %v287_v28, %v226_v26  ;;  %v161_v31 = vpop.f32.mrb[1].mxu0  ;;  %v181_v32 = vpop.f32.mrb[1].mxu1 }
 0x116   :  { %v162_v33 = vadd.f32 %v226_v26, %v161_v31  ;;  %v182_v34 = vadd.f32 %v226_v26, %v181_v32 }
 0x117   :  { %201 = vst.msk [vmem:[#allocation7 + $0x8] sm:$0xff] %vm70_vm0, %v167_v29  ;;  %205 = vst.msk [vmem:[#allocation7 + $0x28] sm:$0xff] %vm70_vm0, %v187_v30 }
 0x118   :  { %200 = vst.msk [vmem:[#allocation7] sm:$0xff] %vm70_vm0, %v162_v33  ;;  %204 = vst.msk [vmem:[#allocation7 + $0x20] sm:$0xff] %vm70_vm0, %v182_v34  ;;  %v284_v35 = vpop.f32.mrb[2].mxu0  ;;  %v290_v36 = vpop.f32.mrb[2].mxu1 }
 0x119   :  { %v177_v37 = vadd.f32 %v284_v35, %v226_v26  ;;  %v197_v38 = vadd.f32 %v290_v36, %v226_v26  ;;  %v171_v39 = vpop.f32.mrb[3].mxu0  ;;  %v191_v40 = vpop.f32.mrb[3].mxu1 }
 0x11a   :  { %v172_v41 = vadd.f32 %v226_v26, %v171_v39  ;;  %v192_v42 = vadd.f32 %v226_v26, %v191_v40 }
 0x11b   :  { %203 = vst.msk [vmem:[#allocation7 + $0x18] sm:$0xff] %vm70_vm0, %v177_v37  ;;  %207 = vst.msk [vmem:[#allocation7 + $0x38] sm:$0xff] %vm70_vm0, %v197_v38 }
 0x11c   :  { %202 = vst.msk [vmem:[#allocation7 + $0x10] sm:$0xff] %vm70_vm0, %v172_v41  ;;  %206 = vst.msk [vmem:[#allocation7 + $0x30] sm:$0xff] %vm70_vm0, %v192_v42 }
 0x11d   :  { %387 = shalt.err (!%p384_p6)
}
 0x11e   :  { %s388_s15 = scalar_lea.hbm %s496_s3, 1024 }
 0x11f   :  { %p389_p7 = scmp.ne.s32.totalorder %s496_s3, %s388_s15  ;;  %p392_p8 = scmp.lt.u32.totalorder %s388_s15, %s496_s3 }
 0x121   :  { %p394_p9 = pnand %p392_p8, %p389_p7 }
 0x123   :  { %397 = shalt.err (!%p394_p9)
}
 0x124   :  { %219 = dma.vmem_to_hbm [thread:$0]  %s214_s12, 1024, %s496_s3, [#allocation4], %s405_s22, %s405_s22, %s406_s23  }
 0x125   :  { %402 = dma.done.wait [#allocation4], 1024  }
 0x126   :  { %403 = vsyncadd [#allocation4], 4294966272 }
 0x127   :  { %223 = vsyncpa [#allocation3], 1 }
 0x128   :  { %224 = vsyncpa [#allocation6], 1 }
 0x129   :  { %225 = vsyncpa [#allocation4], 1 }

</bundles_post_ra>
